<compile_context>
chip_gen: v5e
topology: v5e:2x2
jax: 0.10.0
libtpu: 0.0.40
codegen_flags: <defaults>
</compile_context>

<pallas_src>
import functools

import jax
import jax.numpy as jnp
from jax.experimental import pallas as pl
from jax.experimental.pallas import tpu as pltpu

LANE = 128  # pad feature dims to a multiple of the TPU lane width


# ---------------------------------------------------------------------------
# Fused Pallas kernel: all GCN layers + mean readout in one call
# ---------------------------------------------------------------------------
def fused_gcn_kernel(a_ref, h0_ref, snorm_ref, member_ref, *rest,
                     residual_flags, eps):
    """Inputs (all resident in VMEM for the whole forward pass):
         a_ref      [N, N]      bf16   normalized adjacency D^-1/2 A D^-1/2
         h0_ref     [N, Dpad]   f32    node features (zero-padded to 128 lanes)
         snorm_ref  [N, 1]      f32    per-node 1/sqrt(num_nodes(graph))
         member_ref [G, N]      f32    mean-readout membership (rows sum to 1)
         rest       4 refs per layer (w bf16 [Dpad,Dpad], b/gamma/beta f32
                    [1,Dpad]) followed by the output ref [G, Dpad] f32.
    """
    num_layers = len(residual_flags)
    param_refs = rest[:4 * num_layers]
    out_ref = rest[4 * num_layers]

    a = a_ref[...]                      # [N, N]     bf16
    h = h0_ref[...]                     # [N, Dpad]  f32 carry
    snorm = snorm_ref[...]              # [N, 1]     f32

    for l in range(num_layers):
        w = param_refs[4 * l][...]          # [Dpad, Dpad] bf16
        b = param_refs[4 * l + 1][...]      # [1, Dpad]    f32
        gamma = param_refs[4 * l + 2][...]  # [1, Dpad]    f32
        beta = param_refs[4 * l + 3][...]   # [1, Dpad]    f32

        h_in = h

        # GraphConv: A_norm @ h @ W + b  (bf16 MXU, f32 accumulation).
        hw = jnp.dot(h.astype(jnp.bfloat16), w,
                     preferred_element_type=jnp.float32)        # [N, Dpad]
        z = jnp.dot(a, hw.astype(jnp.bfloat16),
                    preferred_element_type=jnp.float32)         # [N, Dpad]
        z = z + b

        # Graph-size normalization.
        z = z * snorm

        # BatchNorm1d over the node axis (training-mode, biased variance).
        mean = jnp.mean(z, axis=0, keepdims=True)
        diff = z - mean
        var = jnp.mean(diff * diff, axis=0, keepdims=True)
        z = diff * jax.lax.rsqrt(var + eps)
        z = z * gamma + beta

        # ReLU.
        z = jnp.maximum(z, 0.0)

        # Residual (only when the layer's real in_dim == out_dim).
        if residual_flags[l]:
            z = z + h_in

        h = z

    # Fused mean-node readout: hg = M @ h (tiny matmul, rides on MXU slack).
    out_ref[...] = jnp.dot(member_ref[...], h,
                           preferred_element_type=jnp.float32)


# ---------------------------------------------------------------------------
# Wrapper
# ---------------------------------------------------------------------------
def _round_up(x, m):
    return ((x + m - 1) // m) * m


def _pad_cols(x, d):
    pad = d - x.shape[-1]
    if pad <= 0:
        return x
    return jnp.pad(x, [(0, 0)] * (x.ndim - 1) + [(0, pad)])


def gcn_net1_forward(a_norm, nodes_feat, snorm, member, params):
    """GCNNet1.forward: stacked GCN layers + mean readout, one pallas_call."""
    n = nodes_feat.shape[0]
    g = member.shape[0]
    dims = [nodes_feat.shape[1]] + [w.shape[1] for (w, _, _, _) in params]
    dpad = _round_up(max(max(dims), LANE), LANE)

    # Kernel-boundary dtypes: bf16 for MXU operands, f32 for elementwise math.
    a_bf16 = a_norm.astype(jnp.bfloat16)
    h0 = _pad_cols(nodes_feat.astype(jnp.float32), dpad)
    snorm = snorm.astype(jnp.float32).reshape(n, 1)
    member = member.astype(jnp.float32)

    residual_flags = []
    flat_params = []
    d_in = nodes_feat.shape[1]
    for (w, b, gamma, beta) in params:
        d_out = w.shape[1]
        residual_flags.append(d_in == d_out)          # real-dim residual rule
        w_p = jnp.zeros((dpad, dpad), jnp.bfloat16)
        w_p = w_p.at[:w.shape[0], :d_out].set(w.astype(jnp.bfloat16))
        b_p = _pad_cols(b.astype(jnp.float32).reshape(1, -1), dpad)
        g_p = _pad_cols(gamma.astype(jnp.float32).reshape(1, -1), dpad)
        be_p = _pad_cols(beta.astype(jnp.float32).reshape(1, -1), dpad)
        flat_params += [w_p, b_p, g_p, be_p]
        d_in = d_out

    num_layers = len(params)
    flops = num_layers * (2 * n * dpad * dpad + 2 * n * n * dpad) \
        + 2 * g * n * dpad
    bytes_accessed = (
        a_bf16.size * 2 + h0.size * 4 + snorm.size * 4 + member.size * 4
        + sum(int(p.size) * p.dtype.itemsize for p in flat_params)
        + g * dpad * 4)

    vmem = pl.BlockSpec(memory_space=pltpu.MemorySpace.VMEM)
    out = pl.pallas_call(
        functools.partial(fused_gcn_kernel,
                          residual_flags=tuple(residual_flags), eps=1e-5),
        out_shape=jax.ShapeDtypeStruct((g, dpad), jnp.float32),
        in_specs=[vmem] * (4 + len(flat_params)),
        out_specs=vmem,
        cost_estimate=pl.CostEstimate(flops=int(flops), transcendentals=0,
                                      bytes_accessed=int(bytes_accessed)),
        compiler_params=pltpu.CompilerParams(
            vmem_limit_bytes=32 * 1024 * 1024),
    )(a_bf16, h0, snorm, member, *flat_params)

    return out[:, :params[-1][0].shape[1]]


# ---------------------------------------------------------------------------
# Pure-JAX reference (same bf16 matmul / f32 accumulate policy)
# ---------------------------------------------------------------------------
def reference_forward(a_norm, nodes_feat, snorm, member, params):
    a = a_norm.astype(jnp.bfloat16)
    h = nodes_feat.astype(jnp.float32)
    snorm = snorm.astype(jnp.float32).reshape(-1, 1)
    for (w, b, gamma, beta) in params:
        residual = (h.shape[1] == w.shape[1])
        h_in = h
        hw = jnp.dot(h.astype(jnp.bfloat16), w.astype(jnp.bfloat16),
                     preferred_element_type=jnp.float32)
        z = jnp.dot(a, hw.astype(jnp.bfloat16),
                    preferred_element_type=jnp.float32)
        z = z + b.reshape(1, -1)
        z = z * snorm
        mean = jnp.mean(z, axis=0, keepdims=True)
        diff = z - mean
        var = jnp.mean(diff * diff, axis=0, keepdims=True)
        z = diff * jax.lax.rsqrt(var + 1e-5)
        z = z * gamma.reshape(1, -1) + beta.reshape(1, -1)
        z = jnp.maximum(z, 0.0)
        if residual:
            z = z + h_in
        h = z
    return jnp.dot(member.astype(jnp.float32), h)


# ---------------------------------------------------------------------------
# Parameter / graph construction (glue, plain JAX)
# ---------------------------------------------------------------------------
def init_params(key, in_dim, hidden_dims):
    params = []
    d = in_dim
    for hd in hidden_dims:
        key, kw = jax.random.split(key)
        w = (jax.random.normal(kw, (d, hd), jnp.float32)
             * jnp.sqrt(2.0 / (d + hd)))
        b = jnp.zeros((1, hd), jnp.float32)
        gamma = jnp.ones((1, hd), jnp.float32)
        beta = jnp.zeros((1, hd), jnp.float32)
        params.append((w, b, gamma, beta))
        d = hd
    return params


def build_batched_graph(key, nodes_per_graph):
    """(A_norm [N,N], snorm [N,1], member [G,N]) for a batch of ring graphs.

    A_norm = D^{-1/2} A D^{-1/2}  (DGL GraphConv norm='both', no self loops).
    """
    n_total = int(sum(nodes_per_graph))
    n_graphs = len(nodes_per_graph)
    adj = jnp.zeros((n_total, n_total), jnp.float32)
    offset = 0
    for ng in nodes_per_graph:
        idx = jnp.arange(ng)
        adj = adj.at[offset + idx, offset + (idx + 1) % ng].set(1.0)
        adj = adj.at[offset + (idx + 1) % ng, offset + idx].set(1.0)
        key, kc = jax.random.split(key)
        src = jax.random.randint(kc, (ng,), 0, ng)
        dst = (src + 2) % ng
        adj = adj.at[offset + src, offset + dst].set(1.0)
        adj = adj.at[offset + dst, offset + src].set(1.0)
        offset += ng
    adj = adj * (1.0 - jnp.eye(n_total, dtype=jnp.float32))  # no self loops

    deg = jnp.sum(adj, axis=1)
    d_inv_sqrt = 1.0 / jnp.sqrt(jnp.maximum(deg, 1.0))
    a_norm = adj * d_inv_sqrt[:, None] * d_inv_sqrt[None, :]

    snorm = jnp.concatenate(
        [jnp.full((ng, 1), 1.0 / jnp.sqrt(float(ng)), jnp.float32)
         for ng in nodes_per_graph], axis=0)

    member = jnp.zeros((n_graphs, n_total), jnp.float32)
    offset = 0
    for gi, ng in enumerate(nodes_per_graph):
        member = member.at[gi, offset:offset + ng].set(1.0 / float(ng))
        offset += ng
    return a_norm, snorm, member


# ---------------------------------------------------------------------------
if __name__ == "__main__":
    key = jax.random.PRNGKey(0)

    in_dim = 4
    hidden_dims = [32, 32]           # GCNNet1(in_dim=4, hidden_dims=[32, 32])
    nodes_per_graph = [8, 8]         # batch of 2 graphs, 16 nodes total

    k_graph, k_feat, k_params = jax.random.split(key, 3)
    a_norm, snorm, member = build_batched_graph(k_graph, nodes_per_graph)
    n_total = a_norm.shape[0]
    nodes_feat = jax.random.normal(k_feat, (n_total, in_dim), jnp.float32)
    params = init_params(k_params, in_dim, hidden_dims)

    # edges_feat / edges_num_norm_sqrt are unused by GCNNet1.forward.
    hg = gcn_net1_forward(a_norm, nodes_feat, snorm, member, params)
    hg = jax.block_until_ready(hg)

    hg_ref = jax.block_until_ready(
        reference_forward(a_norm, nodes_feat, snorm, member, params))

    assert hg.shape == (len(nodes_per_graph), hidden_dims[-1])
    assert bool(jnp.all(jnp.isfinite(hg)))
    assert bool(jnp.allclose(hg, hg_ref, rtol=2e-2, atol=2e-2))
    print("KERNEL_OK")
</pallas_src>

<mosaic_0001>
module attributes {stable_mosaic.version = 11 : i64} {
  func.func @fused_gcn_kernel(%arg0: memref<16x16xbf16, #tpu.memory_space<vmem>>, %arg1: memref<16x128xf32, #tpu.memory_space<vmem>>, %arg2: memref<16x1xf32, #tpu.memory_space<vmem>>, %arg3: memref<2x16xf32, #tpu.memory_space<vmem>>, %arg4: memref<128x128xbf16, #tpu.memory_space<vmem>>, %arg5: memref<1x128xf32, #tpu.memory_space<vmem>>, %arg6: memref<1x128xf32, #tpu.memory_space<vmem>>, %arg7: memref<1x128xf32, #tpu.memory_space<vmem>>, %arg8: memref<128x128xbf16, #tpu.memory_space<vmem>>, %arg9: memref<1x128xf32, #tpu.memory_space<vmem>>, %arg10: memref<1x128xf32, #tpu.memory_space<vmem>>, %arg11: memref<1x128xf32, #tpu.memory_space<vmem>>, %arg12: memref<2x128xf32, #tpu.memory_space<vmem>>) attributes {dimension_semantics = [], scalar_prefetch = 0 : i64, scratch_operands = 0 : i64, tpu.core_type = #tpu.core_type<tc>} {
    %c0 = arith.constant 0 : index
    %c0_0 = arith.constant 0 : index
    %0 = vector.load %arg0[%c0, %c0_0] : memref<16x16xbf16, #tpu.memory_space<vmem>>, vector<16x16xbf16>
    %c0_1 = arith.constant 0 : index
    %c0_2 = arith.constant 0 : index
    %1 = vector.load %arg1[%c0_1, %c0_2] : memref<16x128xf32, #tpu.memory_space<vmem>>, vector<16x128xf32>
    %c0_3 = arith.constant 0 : index
    %c0_4 = arith.constant 0 : index
    %2 = vector.load %arg2[%c0_3, %c0_4] : memref<16x1xf32, #tpu.memory_space<vmem>>, vector<16x1xf32>
    %c0_5 = arith.constant 0 : index
    %c0_6 = arith.constant 0 : index
    %3 = vector.load %arg4[%c0_5, %c0_6] : memref<128x128xbf16, #tpu.memory_space<vmem>>, vector<128x128xbf16>
    %c0_7 = arith.constant 0 : index
    %c0_8 = arith.constant 0 : index
    %4 = vector.load %arg5[%c0_7, %c0_8] : memref<1x128xf32, #tpu.memory_space<vmem>>, vector<1x128xf32>
    %c0_9 = arith.constant 0 : index
    %c0_10 = arith.constant 0 : index
    %5 = vector.load %arg6[%c0_9, %c0_10] : memref<1x128xf32, #tpu.memory_space<vmem>>, vector<1x128xf32>
    %c0_11 = arith.constant 0 : index
    %c0_12 = arith.constant 0 : index
    %6 = vector.load %arg7[%c0_11, %c0_12] : memref<1x128xf32, #tpu.memory_space<vmem>>, vector<1x128xf32>
    %7 = arith.truncf %1 : vector<16x128xf32> to vector<16x128xbf16>
    %cst = arith.constant dense<0.000000e+00> : vector<16x128xf32>
    %8 = tpu.matmul %7, %3, %cst {dimension_numbers = #tpu.dot_dimension_numbers<[1], [0], [0], [1], [0, 0, 1, 1], [], []>} : vector<16x128xbf16>, vector<128x128xbf16>, vector<16x128xf32> -> vector<16x128xf32>
    %9 = arith.truncf %8 : vector<16x128xf32> to vector<16x128xbf16>
    %cst_13 = arith.constant dense<0.000000e+00> : vector<16x128xf32>
    %10 = tpu.matmul %0, %9, %cst_13 {dimension_numbers = #tpu.dot_dimension_numbers<[1], [0], [0], [1], [0, 0, 1, 1], [], []>} : vector<16x16xbf16>, vector<16x128xbf16>, vector<16x128xf32> -> vector<16x128xf32>
    %11 = vector.broadcast %4 : vector<1x128xf32> to vector<16x128xf32>
    %12 = arith.addf %10, %11 : vector<16x128xf32>
    %13 = vector.broadcast %2 : vector<16x1xf32> to vector<16x128xf32>
    %14 = arith.mulf %12, %13 : vector<16x128xf32>
    %cst_14 = arith.constant dense<0.000000e+00> : vector<128xf32>
    %15 = vector.multi_reduction <add>, %14, %cst_14 [0] : vector<16x128xf32> to vector<128xf32>
    %16 = vector.shape_cast %15 : vector<128xf32> to vector<1x128xf32>
    %cst_15 = arith.constant 1.600000e+01 : f32
    %17 = vector.broadcast %cst_15 : f32 to vector<1x128xf32>
    %18 = arith.divf %16, %17 : vector<1x128xf32>
    %19 = vector.broadcast %18 : vector<1x128xf32> to vector<16x128xf32>
    %20 = arith.subf %14, %19 : vector<16x128xf32>
    %21 = arith.mulf %20, %20 : vector<16x128xf32>
    %cst_16 = arith.constant dense<0.000000e+00> : vector<128xf32>
    %22 = vector.multi_reduction <add>, %21, %cst_16 [0] : vector<16x128xf32> to vector<128xf32>
    %23 = vector.shape_cast %22 : vector<128xf32> to vector<1x128xf32>
    %cst_17 = arith.constant 1.600000e+01 : f32
    %24 = vector.broadcast %cst_17 : f32 to vector<1x128xf32>
    %25 = arith.divf %23, %24 : vector<1x128xf32>
    %cst_18 = arith.constant 9.99999974E-6 : f32
    %26 = vector.broadcast %cst_18 : f32 to vector<1x128xf32>
    %27 = arith.addf %25, %26 : vector<1x128xf32>
    %28 = math.rsqrt %27 : vector<1x128xf32>
    %29 = vector.broadcast %28 : vector<1x128xf32> to vector<16x128xf32>
    %30 = arith.mulf %20, %29 : vector<16x128xf32>
    %31 = vector.broadcast %5 : vector<1x128xf32> to vector<16x128xf32>
    %32 = arith.mulf %30, %31 : vector<16x128xf32>
    %33 = vector.broadcast %6 : vector<1x128xf32> to vector<16x128xf32>
    %34 = arith.addf %32, %33 : vector<16x128xf32>
    %cst_19 = arith.constant 0.000000e+00 : f32
    %35 = vector.broadcast %cst_19 : f32 to vector<16x128xf32>
    %36 = arith.maximumf %34, %35 : vector<16x128xf32>
    %c0_20 = arith.constant 0 : index
    %c0_21 = arith.constant 0 : index
    %37 = vector.load %arg8[%c0_20, %c0_21] : memref<128x128xbf16, #tpu.memory_space<vmem>>, vector<128x128xbf16>
    %c0_22 = arith.constant 0 : index
    %c0_23 = arith.constant 0 : index
    %38 = vector.load %arg9[%c0_22, %c0_23] : memref<1x128xf32, #tpu.memory_space<vmem>>, vector<1x128xf32>
    %c0_24 = arith.constant 0 : index
    %c0_25 = arith.constant 0 : index
    %39 = vector.load %arg10[%c0_24, %c0_25] : memref<1x128xf32, #tpu.memory_space<vmem>>, vector<1x128xf32>
    %c0_26 = arith.constant 0 : index
    %c0_27 = arith.constant 0 : index
    %40 = vector.load %arg11[%c0_26, %c0_27] : memref<1x128xf32, #tpu.memory_space<vmem>>, vector<1x128xf32>
    %41 = arith.truncf %36 : vector<16x128xf32> to vector<16x128xbf16>
    %cst_28 = arith.constant dense<0.000000e+00> : vector<16x128xf32>
    %42 = tpu.matmul %41, %37, %cst_28 {dimension_numbers = #tpu.dot_dimension_numbers<[1], [0], [0], [1], [0, 0, 1, 1], [], []>} : vector<16x128xbf16>, vector<128x128xbf16>, vector<16x128xf32> -> vector<16x128xf32>
    %43 = arith.truncf %42 : vector<16x128xf32> to vector<16x128xbf16>
    %cst_29 = arith.constant dense<0.000000e+00> : vector<16x128xf32>
    %44 = tpu.matmul %0, %43, %cst_29 {dimension_numbers = #tpu.dot_dimension_numbers<[1], [0], [0], [1], [0, 0, 1, 1], [], []>} : vector<16x16xbf16>, vector<16x128xbf16>, vector<16x128xf32> -> vector<16x128xf32>
    %45 = vector.broadcast %38 : vector<1x128xf32> to vector<16x128xf32>
    %46 = arith.addf %44, %45 : vector<16x128xf32>
    %47 = vector.broadcast %2 : vector<16x1xf32> to vector<16x128xf32>
    %48 = arith.mulf %46, %47 : vector<16x128xf32>
    %cst_30 = arith.constant dense<0.000000e+00> : vector<128xf32>
    %49 = vector.multi_reduction <add>, %48, %cst_30 [0] : vector<16x128xf32> to vector<128xf32>
    %50 = vector.shape_cast %49 : vector<128xf32> to vector<1x128xf32>
    %cst_31 = arith.constant 1.600000e+01 : f32
    %51 = vector.broadcast %cst_31 : f32 to vector<1x128xf32>
    %52 = arith.divf %50, %51 : vector<1x128xf32>
    %53 = vector.broadcast %52 : vector<1x128xf32> to vector<16x128xf32>
    %54 = arith.subf %48, %53 : vector<16x128xf32>
    %55 = arith.mulf %54, %54 : vector<16x128xf32>
    %cst_32 = arith.constant dense<0.000000e+00> : vector<128xf32>
    %56 = vector.multi_reduction <add>, %55, %cst_32 [0] : vector<16x128xf32> to vector<128xf32>
    %57 = vector.shape_cast %56 : vector<128xf32> to vector<1x128xf32>
    %cst_33 = arith.constant 1.600000e+01 : f32
    %58 = vector.broadcast %cst_33 : f32 to vector<1x128xf32>
    %59 = arith.divf %57, %58 : vector<1x128xf32>
    %cst_34 = arith.constant 9.99999974E-6 : f32
    %60 = vector.broadcast %cst_34 : f32 to vector<1x128xf32>
    %61 = arith.addf %59, %60 : vector<1x128xf32>
    %62 = math.rsqrt %61 : vector<1x128xf32>
    %63 = vector.broadcast %62 : vector<1x128xf32> to vector<16x128xf32>
    %64 = arith.mulf %54, %63 : vector<16x128xf32>
    %65 = vector.broadcast %39 : vector<1x128xf32> to vector<16x128xf32>
    %66 = arith.mulf %64, %65 : vector<16x128xf32>
    %67 = vector.broadcast %40 : vector<1x128xf32> to vector<16x128xf32>
    %68 = arith.addf %66, %67 : vector<16x128xf32>
    %cst_35 = arith.constant 0.000000e+00 : f32
    %69 = vector.broadcast %cst_35 : f32 to vector<16x128xf32>
    %70 = arith.maximumf %68, %69 : vector<16x128xf32>
    %71 = arith.addf %70, %36 : vector<16x128xf32>
    %c0_36 = arith.constant 0 : index
    %c0_37 = arith.constant 0 : index
    %72 = vector.load %arg3[%c0_36, %c0_37] : memref<2x16xf32, #tpu.memory_space<vmem>>, vector<2x16xf32>
    %cst_38 = arith.constant dense<0.000000e+00> : vector<2x128xf32>
    %73 = tpu.matmul %72, %71, %cst_38 {dimension_numbers = #tpu.dot_dimension_numbers<[1], [0], [0], [1], [0, 0, 1, 1], [], []>} : vector<2x16xf32>, vector<16x128xf32>, vector<2x128xf32> -> vector<2x128xf32>
    %c0_39 = arith.constant 0 : index
    %c0_40 = arith.constant 0 : index
    %74 = vector.load %arg12[%c0_39, %c0_40] : memref<2x128xf32, #tpu.memory_space<vmem>>, vector<2x128xf32>
    tpu.vector_store %arg12[%c0_39, %c0_40], %73 {strides = array<i32>} : memref<2x128xf32, #tpu.memory_space<vmem>>, vector<2x128xf32>,
    return
  }
}

</mosaic_0001>

<bundles_post_ra>
// kernel: tpu_custom_call.1
= control target key start
LH: loop header
LB: loop body
LE: loop exit
PB: predicated region body
PF: predicated region fallthrough
CT: control target
= control target key end

     0   :  { %17 = vsyncpa [#allocation3], 0  ;;  %s814_s0 = inlined_call_operand.hbm [shape: bf16[16,16], index: 0, kind: input, shape index: {}]   ;;  %s815_s1 = inlined_call_operand.vmem [shape: f32[16,128], index: 1, kind: input, shape index: {}]   ;;  %s816_s2 = inlined_call_operand.vmem [shape: f32[16,1], index: 2, kind: input, shape index: {}]   ;;  %s817_s3 = inlined_call_operand.vmem [shape: f32[2,16], index: 3, kind: input, shape index: {}]   ;;  %s818_s4 = inlined_call_operand.hbm [shape: bf16[128,128], index: 4, kind: input, shape index: {}]   ;;  %s819_s5 = inlined_call_operand.vmem [shape: f32[1,128], index: 5, kind: input, shape index: {}]   ;;  %s820_s6 = inlined_call_operand.vmem [shape: f32[1,128], index: 6, kind: input, shape index: {}]   ;;  %s821_s7 = inlined_call_operand.vmem [shape: f32[1,128], index: 7, kind: input, shape index: {}]   ;;  %s822_s8 = inlined_call_operand.hbm [shape: bf16[128,128], index: 8, kind: input, shape index: {}]   ;;  %s823_s9 = inlined_call_operand.vmem [shape: f32[1,128], index: 9, kind: input, shape index: {}]   ;;  %s824_s10 = inlined_call_operand.vmem [shape: f32[1,128], index: 10, kind: input, shape index: {}]   ;;  %s825_s11 = inlined_call_operand.vmem [shape: f32[1,128], index: 11, kind: input, shape index: {}]   ;;  %s826_s12 = inlined_call_operand.hbm [shape: f32[2,128], index: 12, kind: output, shape index: {}]  }
   0x1   :  { %18 = vsyncpa [#allocation6], 0 }
   0x2   :  { %19 = vsyncpa [#allocation4], 0  ;;  %s43_s23 = sshll.u32 %s818_s4, 4  ;;  %s672_s24 = smov [#allocation5]   ;;  %s44_s23 = int_to_ptr.hbm [resolvable:$true] %s43_s23 }
   0x3   :  { %s45_s25 = sshll.u32 %s672_s24, 4  ;;  %s24_s28 = sshll.u32 %s814_s0, 4  ;;  %s46_s25 = int_to_ptr.vmem [resolvable:$true] %s45_s25  ;;  %s25_s28 = int_to_ptr.hbm [resolvable:$true] %s24_s28 }
   0x4   :  { %s673_s29 = smov 64   ;;  %s674_s30 = smov 4  }
   0x5   :  { %51 = dma.hbm_to_vmem [thread:$0]  %s44_s23, 1024, %s46_s25, [#allocation6], %s673_s29, %s673_s29, %s674_s30  }
   0x6   :  { %s675_s13 = smov [#allocation2]   ;;  %s62_s17 = sshll.u32 %s822_s8, 4  ;;  %s63_s17 = int_to_ptr.hbm [resolvable:$true] %s62_s17 }
   0x7   :  { %s26_s14 = sshll.u32 %s675_s13, 4  ;;  %s676_s4 = smov [#allocation7]   ;;  %s27_s14 = int_to_ptr.vmem [resolvable:$true] %s26_s14 }
   0x8   :  { %32 = dma.hbm_to_vmem [thread:$0]  %s25_s28, 128, %s27_s14, [#allocation3], %s673_s29, %s673_s29, %s674_s30  }
   0x9   :  { %s64_s18 = sshll.u32 %s676_s4, 4  ;;  %s65_s18 = int_to_ptr.vmem [resolvable:$true] %s64_s18 }
   0xa   :  { %70 = dma.hbm_to_vmem [thread:$0]  %s63_s17, 1024, %s65_s18, [#allocation6], %s673_s29, %s673_s29, %s674_s30  }
   0xb   :  { %666 = dma.done.wait [#allocation3], 128  }
   0xc   :  { %667 = vsyncadd [#allocation3], 4294967168 }
   0xd   :  { %668 = dma.done.wait [#allocation6], 2048  }
   0xe   :  { %669 = vsyncadd [#allocation6], 4294965248  ;;  %v540_v0 = vld [vmem:[#allocation5 + $0x38] sm:$0xff]  ;;  %v539_v1 = vld [vmem:[#allocation5 + $0x30] sm:$0xff]  ;;  %v677_v12 = vmov 0   ;;  %vm187_vm0 = vcmask 130048  }
   0xf   :  { %164 = vmatpush.bf16.msra.mxu0 %v540_v0  ;;  %v538_v2 = vld [vmem:[#allocation5 + $0x28] sm:$0xff]  ;;  %v537_v3 = vld [vmem:[#allocation5 + $0x20] sm:$0xff]  ;;  %v536_v4 = vld [vmem:[#allocation5 + $0x18] sm:$0xff]  ;;  %557 = vset.pattern.permute.xlu0 %v677_v12  ;;  %v678_v18 = vmov 16.0   ;;  %s450_s17 = sshll.u32 %s826_s12, 4  ;;  %s451_s17 = int_to_ptr.hbm [resolvable:$true] %s450_s17 }
  0x10   :  { %v535_v5 = vld [vmem:[#allocation5 + $0x10] sm:$0xff]  ;;  %v534_v6 = vld [vmem:[#allocation5 + $0x8] sm:$0xff]  ;;  %v533_v7 = vld [vmem:[#allocation5] sm:$0xff]  ;;  %564 = vrcp.f32 %v678_v18 }
  0x11   :  { %v92_v8 = vld [vmem:[%s815_s1] sm:$0xff]  ;;  %v93_v9 = vld [vmem:[%s815_s1 + $0x8] sm:$0xff]  ;;  %v547_v36 = vld [vmem:[#allocation7 + $0x30] sm:$0xff] }
  0x12   :  { %v115_v10 = vpack.c.bf16 %v93_v9, %v92_v8  ;;  %v94_v11 = vld [vmem:[%s816_s2] sm:$0xff]  ;;  %v95_v13 = vld [vmem:[%s816_s2 + $0x8] sm:$0xff]  ;;  %v546_v40 = vld [vmem:[#allocation7 + $0x28] sm:$0xff] }
  0x13   :  { %165 = vmatpush.bf16.msra.mxu0 %v539_v1  ;;  %207 = vperm.xlu0 %557, %v94_v11   ;;  %v766_v17 = vld [vmem:[#allocation2] sm:$0xff]  ;;  %v545_v44 = vld [vmem:[#allocation7 + $0x20] sm:$0xff]  ;;  %v543_v52 = vld [vmem:[#allocation7 + $0x10] sm:$0xff] }
  0x14   :  { %v558_v21 = vld [vmem:[%s819_s5] ss:$0 sm:$0xff]  ;;  %v542_v55 = vld [vmem:[#allocation7 + $0x8] sm:$0xff]  ;;  %v541_v57 = vld [vmem:[#allocation7] sm:$0xff] }
  0x15   :  { %v548_v32 = vld [vmem:[#allocation7 + $0x38] sm:$0xff] }
  0x16   :  { %v565_v22 = vpop.eup %564  ;;  %337 = vmatpush.bf16.msra.mxu2 %v548_v32  ;;  %v544_v48 = vld [vmem:[#allocation7 + $0x18] sm:$0xff] }
  0x17   :  { %166 = vmatpush.bf16.msra.mxu0 %v538_v2  ;;  %v225_v25 = vmul.f32 16.0, %v565_v22  ;;  %vm229_vm1 = vweird.f32 %v565_v22  ;;  %v560_v9 = vld [vmem:[%s821_s7] ss:$0 sm:$0xff] }
  0x19   :  { %v226_v30 = vsub.f32 1.0, %v225_v25 }
  0x1a   :  { %338 = vmatpush.bf16.msra.mxu2 %v547_v36 }
  0x1b   :  { %167 = vmatpush.bf16.msra.mxu0 %v537_v3  ;;  %212 = vperm.xlu0 %557, %v95_v13   ;;  %v227_v34 = vmul.f32 %v565_v22, %v226_v30 }
  0x1d   :  { %v228_v38 = vadd.f32 %v565_v22, %v227_v34 }
  0x1e   :  { %339 = vmatpush.bf16.msra.mxu2 %v546_v40 }
  0x1f   :  { %168 = vmatpush.bf16.msra.mxu0 %v536_v4  ;;  %v779_v42 = vsel %vm229_vm1, %v565_v22, %v228_v38 }
  0x22   :  { %340 = vmatpush.bf16.msra.mxu2 %v545_v44 }
  0x23   :  { %169 = vmatpush.bf16.msra.mxu0 %v535_v5  ;;  %v559_v5 = vld [vmem:[%s820_s6] ss:$0 sm:$0xff] }
  0x26   :  { %341 = vmatpush.bf16.msra.mxu2 %v544_v48 }
  0x27   :  { %170 = vmatpush.bf16.msra.mxu0 %v534_v6 }
  0x2a   :  { %342 = vmatpush.bf16.msra.mxu2 %v543_v52 }
  0x2b   :  { %171 = vmatpush.bf16.msra.mxu0 %v533_v7 }
  0x2e   :  { %172 = vmatmul.bf16.vlgmr.msra.gmra.mxu0 %v115_v10  ;;  %343 = vmatpush.bf16.msra.mxu2 %v542_v55  ;;  %v562_v55 = vld [vmem:[%s824_s10] ss:$0 sm:$0xff]  ;;  %s679_s10 = smov [#allocation8]  }
  0x2f   :  { %s448_s15 = sshll.u32 %s679_s10, 4  ;;  %s449_s15 = int_to_ptr.vmem [resolvable:$true] %s448_s15 }
  0x32   :  { %344 = vmatpush.bf16.msra.mxu2 %v541_v57 }
  0x85   :  { %v770_v19 = vpop.permute.xlu0 %207 }
  0x8d   :  { %v775_v27 = vpop.permute.xlu0 %212 }
  0xab   :  { %v173_v14 = vpop.f32.mrf.mxu0 }
  0xb3   :  { %v175_v15 = vpop.f32.mrf.mxu0 }
  0xb4   :  { %v178_v16 = vpack.c.bf16 %v175_v15, %v173_v14 }
  0xb6   :  { %198 = vmatpush.bf16.msra.mxu1 %v178_v16 }
  0xb9   :  { %497 = vmatmul.msk.bf16.vlgmr.msra.gmra.mxu1 %vm187_vm0, %v766_v17 }
 0x136   :  { %v200_v20 = vpop.f32.mrf.mxu1 }
 0x137   :  { %v201_v23 = vadd.f32 %v558_v21, %v200_v20 }
 0x139   :  { %v215_v28 = vmul.f32 %v770_v19, %v201_v23  ;;  %v561_v23 = vld [vmem:[%s823_s9] ss:$0 sm:$0xff] }
 0x13e   :  { %v202_v24 = vpop.f32.mrf.mxu1 }
 0x13f   :  { %v203_v26 = vadd.f32 %v558_v21, %v202_v24 }
 0x141   :  { %v216_v29 = vmul.f32 %v775_v27, %v203_v26 }
 0x143   :  { %v217_v31 = vadd.f32 %v216_v29, %v215_v28 }
 0x145   :  { %v218_v33 = vrot.slane %v217_v31, 4 }
 0x147   :  { %v219_v35 = vadd.f32 %v218_v33, %v217_v31 }
 0x149   :  { %v220_v37 = vrot.slane %v219_v35, 2 }
 0x14b   :  { %v221_v39 = vadd.f32 %v220_v37, %v219_v35 }
 0x14d   :  { %v222_v41 = vrot.slane %v221_v39, 1 }
 0x14f   :  { %v223_v43 = vadd.f32 %v222_v41, %v221_v39 }
 0x151   :  { %v231_v45 = vmul.f32 %v779_v42, %v223_v43 }
 0x153   :  { %v232_v46 = vsub.f32 %v215_v28, %v231_v45  ;;  %v233_v47 = vsub.f32 %v216_v29, %v231_v45 }
 0x155   :  { %v234_v49 = vmul.f32 %v232_v46, %v232_v46  ;;  %v235_v50 = vmul.f32 %v233_v47, %v233_v47 }
 0x157   :  { %v236_v51 = vadd.f32 %v235_v50, %v234_v49 }
 0x159   :  { %v237_v53 = vrot.slane %v236_v51, 4 }
 0x15b   :  { %v238_v54 = vadd.f32 %v237_v53, %v236_v51 }
 0x15d   :  { %v239_v56 = vrot.slane %v238_v54, 2 }
 0x15f   :  { %v240_v58 = vadd.f32 %v239_v56, %v238_v54 }
 0x161   :  { %v241_v59 = vrot.slane %v240_v58, 1 }
 0x163   :  { %v242_v60 = vadd.f32 %v241_v59, %v240_v58 }
 0x165   :  { %v243_v61 = vmul.f32 %v242_v60, %v779_v42 }
 0x167   :  { %v244_v62 = vadd.f32 1e-05, %v243_v61 }
 0x169   :  { %566 = vrsqrt.f32 %v244_v62  ;;  %vm251_vm3 = vweird.f32 %v244_v62 }
 0x16f   :  { %v567_v63 = vpop.eup %566 }
 0x170   :  { %v246_v0 = vmul.f32 %v567_v63, %v244_v62  ;;  %vm252_vm2 = vweird.f32 %v567_v63 }
 0x171   :  { %vm253_vm4 = vmor %vm251_vm3, %vm252_vm2 }
 0x172   :  { %v247_v1 = vmul.f32 %v567_v63, %v246_v0 }
 0x174   :  { %v248_v2 = vmul.f32 0.5, %v247_v1 }
 0x176   :  { %v249_v3 = vsub.f32 1.5, %v248_v2 }
 0x178   :  { %v250_v4 = vmul.f32 %v567_v63, %v249_v3  ;;  %v418_v3 = vld [vmem:[%s817_s3] sm:$0x3] }
 0x17a   :  { %v254_v6 = vsel %vm253_vm4, %v567_v63, %v250_v4 }
 0x17b   :  { %v256_v7 = vmul.f32 %v254_v6, %v233_v47  ;;  %v255_v8 = vmul.f32 %v254_v6, %v232_v46 }
 0x17d   :  { %v260_v10 = vmul.f32 %v559_v5, %v255_v8  ;;  %v261_v11 = vmul.f32 %v559_v5, %v256_v7 }
 0x17f   :  { %v789_v12 = vadd.f32 %v560_v9, %v260_v10  ;;  %v266_v13 = vadd.f32 %v560_v9, %v261_v11 }
 0x181   :  { %v267_v14 = vmax.f32 %v789_v12, 0.0  ;;  %v268_v15 = vmax.f32 %v266_v13, 0.0 }
 0x183   :  { %v288_v16 = vpack.c.bf16 %v268_v15, %v267_v14 }
 0x185   :  { %345 = vmatmul.bf16.vlgmr.msra.gmra.mxu2 %v288_v16 }
 0x208   :  { %v346_v18 = vpop.f32.mrf.mxu2 }
 0x210   :  { %v348_v20 = vpop.f32.mrf.mxu2 }
 0x211   :  { %v351_v21 = vpack.c.bf16 %v348_v20, %v346_v18 }
 0x213   :  { %362 = vmatpush.bf16.msra.mxu3 %v351_v21 }
 0x216   :  { %530 = vmatmul.msk.bf16.vlgmr.msra.gmra.mxu3 %vm187_vm0, %v766_v17 }
 0x299   :  { %v364_v22 = vpop.f32.mrf.mxu3 }
 0x29a   :  { %v365_v24 = vadd.f32 %v561_v23, %v364_v22 }
 0x29c   :  { %v369_v28 = vmul.f32 %v365_v24, %v770_v19 }
 0x2a1   :  { %v366_v25 = vpop.f32.mrf.mxu3 }
 0x2a2   :  { %v367_v26 = vadd.f32 %v561_v23, %v366_v25 }
 0x2a4   :  { %v370_v29 = vmul.f32 %v367_v26, %v775_v27 }
 0x2a6   :  { %v371_v30 = vadd.f32 %v370_v29, %v369_v28 }
 0x2a8   :  { %v372_v31 = vrot.slane %v371_v30, 4 }
 0x2aa   :  { %v373_v32 = vadd.f32 %v372_v31, %v371_v30 }
 0x2ac   :  { %v374_v33 = vrot.slane %v373_v32, 2 }
 0x2ae   :  { %v375_v34 = vadd.f32 %v374_v33, %v373_v32 }
 0x2b0   :  { %v376_v35 = vrot.slane %v375_v34, 1 }
 0x2b2   :  { %v377_v36 = vadd.f32 %v376_v35, %v375_v34 }
 0x2b4   :  { %v378_v17 = vmul.f32 %v377_v36, %v779_v42 }
 0x2b6   :  { %v379_v37 = vsub.f32 %v369_v28, %v378_v17  ;;  %v380_v38 = vsub.f32 %v370_v29, %v378_v17 }
 0x2b8   :  { %v381_v39 = vmul.f32 %v379_v37, %v379_v37  ;;  %v382_v40 = vmul.f32 %v380_v38, %v380_v38 }
 0x2ba   :  { %v383_v41 = vadd.f32 %v382_v40, %v381_v39 }
 0x2bc   :  { %v384_v43 = vrot.slane %v383_v41, 4 }
 0x2be   :  { %v385_v44 = vadd.f32 %v384_v43, %v383_v41 }
 0x2c0   :  { %v386_v45 = vrot.slane %v385_v44, 2 }
 0x2c2   :  { %v387_v19 = vadd.f32 %v386_v45, %v385_v44 }
 0x2c4   :  { %v388_v46 = vrot.slane %v387_v19, 1 }
 0x2c6   :  { %v389_v27 = vadd.f32 %v388_v46, %v387_v19 }
 0x2c8   :  { %v390_v47 = vmul.f32 %v389_v27, %v779_v42  ;;  %v563_v42 = vld [vmem:[%s825_s11] ss:$0 sm:$0xff] }
 0x2ca   :  { %v391_v48 = vadd.f32 1e-05, %v390_v47 }
 0x2cc   :  { %568 = vrsqrt.f32 %v391_v48  ;;  %vm398_vm6 = vweird.f32 %v391_v48 }
 0x2d2   :  { %v569_v49 = vpop.eup %568 }
 0x2d3   :  { %v393_v50 = vmul.f32 %v569_v49, %v391_v48  ;;  %vm399_vm5 = vweird.f32 %v569_v49 }
 0x2d4   :  { %vm400_vm7 = vmor %vm398_vm6, %vm399_vm5 }
 0x2d5   :  { %v394_v51 = vmul.f32 %v569_v49, %v393_v50 }
 0x2d7   :  { %v395_v52 = vmul.f32 0.5, %v394_v51 }
 0x2d9   :  { %v396_v53 = vsub.f32 1.5, %v395_v52 }
 0x2db   :  { %v397_v54 = vmul.f32 %v569_v49, %v396_v53 }
 0x2dd   :  { %v401_v56 = vsel %vm400_vm7, %v569_v49, %v397_v54 }
 0x2de   :  { %v403_v57 = vmul.f32 %v401_v56, %v380_v38  ;;  %v402_v58 = vmul.f32 %v401_v56, %v379_v37 }
 0x2e0   :  { %v408_v59 = vmul.f32 %v562_v55, %v403_v57  ;;  %v407_v60 = vmul.f32 %v562_v55, %v402_v58 }
 0x2e2   :  { %v413_v61 = vadd.f32 %v563_v42, %v408_v59  ;;  %v412_v62 = vadd.f32 %v563_v42, %v407_v60 }
 0x2e4   :  { %v415_v63 = vmax.f32 %v413_v61, 0.0  ;;  %v414_v0 = vmax.f32 %v412_v62, 0.0 }
 0x2e6   :  { %v417_v1 = vadd.f32 %v415_v63, %v268_v15  ;;  %v416_v2 = vadd.f32 %v414_v0, %v267_v14 }
 0x2e8   :  { %436 = vmatpush.msrb.mxu1 %v417_v1 }
 0x2ea   :  { %437 = vmatpush.msrb.mxu1 %v416_v2 }
 0x2eb   :  { %531 = vmatmul.msk.f32.vlgmr.msrb.gmra.mxu1 %vm187_vm0, %v418_v3 }
 0x368   :  { %v439_v4 = vpop.f32.mrf.mxu1 }
 0x369   :  { %442 = vst [vmem:[#allocation8] sm:$0x3] %v439_v4 }
 0x36a   :  { %453 = dma.vmem_to_hbm [thread:$0]  %s449_s15, 32, %s451_s17, [#allocation4]  }
 0x36b   :  { %670 = dma.done.wait [#allocation4], 32  }
 0x36c   :  { %671 = vsyncadd [#allocation4], 4294967264 }
 0x36d   :  { %458 = vsyncpa [#allocation3], 1 }
 0x36e   :  { %459 = vsyncpa [#allocation6], 1 }
 0x36f   :  { %460 = vsyncpa [#allocation4], 1 }

</bundles_post_ra>
